<compile_context>
chip_gen: v7x
topology: tpu7x:2x2x1
jax: 0.10.0
libtpu: 0.0.40
codegen_flags: <defaults>
</compile_context>

<pallas_src>
import functools

import numpy as np
import jax
import jax.numpy as jnp
from jax import lax
from jax.experimental import pallas as pl
from jax.experimental.pallas import tpu as pltpu


# ----------------------------------------------------------------------------
# Kernel: one grid step == one batch element; writes the raw per-batch sum.
# ----------------------------------------------------------------------------
def _igd_loss_kernel(img1_ref, img2_ref, out_ref, *, H, W, eps):
    L = H * W
    d = img1_ref[0] - img2_ref[0]                      # (C, L), lane-dense f32

    def shift(a, k):
        # result[..., p] = a[..., p + k]  (wraps; wrapped/row-crossing tail is
        # masked out below, so wrap values never contribute)
        return jnp.concatenate([a[:, k:], a[:, :k]], axis=-1)

    # Analytic validity masks for the "valid" (no-padding) conv outputs.
    p = lax.broadcasted_iota(jnp.int32, (1, L), 1)     # flat pixel index y*W+x
    hmask = ((p % W) < (W - 2)).astype(jnp.float32)    # x <= W-3
    vmask = (p < (H - 2) * W).astype(jnp.float32)      # y <= H-3

    # Depthwise [-1, 2, -1] gradients of the difference image
    # (PyTorch conv is cross-correlation: -d[p] + 2*d[p+1] - d[p+2]).
    hg = 2.0 * shift(d, 1) - d - shift(d, 2)
    vg = 2.0 * shift(d, W) - d - shift(d, 2 * W)

    e2 = eps * eps
    hsum = jnp.sum(jnp.sqrt(hg * hg + e2) * hmask)
    vsum = jnp.sum(jnp.sqrt(vg * vg + e2) * vmask)
    out_ref[...] = jnp.full(out_ref.shape, hsum + vsum, out_ref.dtype)


# ----------------------------------------------------------------------------
# Wrapper: layout plumbing + final normalization / weighting.
# ----------------------------------------------------------------------------
def image_gradient_difference_loss(image1, image2, *, weight=1.0, eps=1e-3):
    # TODO(synk): the optional `validMask` multiply (default empty tensor in
    # the PyTorch module, i.e. disabled) is not implemented.
    N, C, H, W = image1.shape
    assert image2.shape == image1.shape
    assert H >= 3 and W >= 3
    L = H * W
    a = image1.reshape(N, C, L).astype(jnp.float32)    # free reshape of NCHW
    b = image2.reshape(N, C, L).astype(jnp.float32)

    kernel = functools.partial(_igd_loss_kernel, H=H, W=W, eps=float(eps))
    raw = pl.pallas_call(
        kernel,
        out_shape=jax.ShapeDtypeStruct((N, 1, 1), jnp.float32),
        grid_spec=pltpu.PrefetchScalarGridSpec(
            num_scalar_prefetch=0,
            grid=(N,),
            in_specs=[pl.BlockSpec((1, C, L), lambda n: (n, 0, 0)),
                      pl.BlockSpec((1, C, L), lambda n: (n, 0, 0))],
            out_specs=pl.BlockSpec((1, 1, 1), lambda n: (n, 0, 0)),
        ),
        compiler_params=pltpu.CompilerParams(
            dimension_semantics=("parallel",)),
    )(a, b)
    # hloss and vloss are each raw_sum / (N*C*H*W); total = (h + v) * weight.
    return jnp.sum(raw) / float(N * C * H * W) * float(weight)


# ----------------------------------------------------------------------------
# Pure-numpy reference mirroring the PyTorch module (valid conv, [-1,2,-1]).
# ----------------------------------------------------------------------------
def _np_ref_loss(image1, image2, weight=1.0, eps=1e-3):
    x1 = np.asarray(image1, np.float64)
    x2 = np.asarray(image2, np.float64)
    N, C, H, W = x1.shape

    def hgrad(x):
        return -x[..., :, :-2] + 2.0 * x[..., :, 1:-1] - x[..., :, 2:]

    def vgrad(x):
        return -x[..., :-2, :] + 2.0 * x[..., 1:-1, :] - x[..., 2:, :]

    denom = float(N * C * H * W)
    hloss = np.sqrt((hgrad(x1) - hgrad(x2)) ** 2 + eps ** 2).sum() / denom
    vloss = np.sqrt((vgrad(x1) - vgrad(x2)) ** 2 + eps ** 2).sum() / denom
    return (hloss + vloss) * weight


if __name__ == "__main__":
    N, C, H, W = 2, 4, 16, 16
    key = jax.random.PRNGKey(0)
    k1, k2 = jax.random.split(key)
    img1 = jax.random.uniform(k1, (N, C, H, W), jnp.float32, -1.0, 1.0)
    img2 = jax.random.uniform(k2, (N, C, H, W), jnp.float32, -1.0, 1.0)

    loss = image_gradient_difference_loss(img1, img2, weight=1.0)
    loss = jax.block_until_ready(loss)

    ref = _np_ref_loss(np.asarray(img1), np.asarray(img2), weight=1.0, eps=1e-3)
    np.testing.assert_allclose(float(loss), ref, rtol=1e-4, atol=1e-6)

    # Identical-image sanity check: every gradient difference is 0, so the
    # loss collapses to eps * (H*(W-2) + (H-2)*W) / (H*W).
    loss0 = jax.block_until_ready(
        image_gradient_difference_loss(img1, img1, weight=1.0))
    expected0 = 1e-3 * (H * (W - 2) + (H - 2) * W) / (H * W)
    np.testing.assert_allclose(float(loss0), expected0, rtol=1e-4)

    print("KERNEL_OK")
</pallas_src>

<mosaic_0001>
module attributes {stable_mosaic.version = 11 : i64} {
  func.func @_igd_loss_kernel(%arg0: i32, %arg1: memref<1x4x256xf32, #tpu.memory_space<vmem>>, %arg2: memref<1x4x256xf32, #tpu.memory_space<vmem>>, %arg3: memref<1x1x1xf32, #tpu.memory_space<vmem>>) attributes {dimension_semantics = [#tpu.dimension_semantics<parallel>], iteration_bounds = array<i64: 2>, scalar_prefetch = 0 : i64, scratch_operands = 0 : i64, tpu.core_type = #tpu.core_type<tc>, window_params = [{transform_indices = @transform_0, window_bounds = array<i64: 1, 4, 256>}, {transform_indices = @transform_1, window_bounds = array<i64: 1, 4, 256>}, {transform_indices = @transform_2, window_bounds = array<i64: 1, 1, 1>}]} {
    %c0 = arith.constant 0 : index
    %c0_0 = arith.constant 0 : index
    %c0_1 = arith.constant 0 : index
    %0 = vector.load %arg1[%c0, %c0_0, %c0_1] : memref<1x4x256xf32, #tpu.memory_space<vmem>>, vector<1x4x256xf32>
    %1 = vector.shape_cast %0 : vector<1x4x256xf32> to vector<4x256xf32>
    %c0_2 = arith.constant 0 : index
    %c0_3 = arith.constant 0 : index
    %c0_4 = arith.constant 0 : index
    %2 = vector.load %arg2[%c0_2, %c0_3, %c0_4] : memref<1x4x256xf32, #tpu.memory_space<vmem>>, vector<1x4x256xf32>
    %3 = vector.shape_cast %2 : vector<1x4x256xf32> to vector<4x256xf32>
    %4 = arith.subf %1, %3 : vector<4x256xf32>
    %5 = tpu.iota {dimensions = array<i32: 1>} : vector<1x256xi32>
    %c16_i32 = arith.constant 16 : i32
    %c0_i32 = arith.constant 0 : i32
    %6 = arith.cmpi eq, %c16_i32, %c0_i32 : i32
    %c1_i32 = arith.constant 1 : i32
    %7 = arith.select %6, %c1_i32, %c16_i32 : i32
    %8 = vector.broadcast %7 : i32 to vector<1x256xi32>
    %9 = arith.remsi %5, %8 : vector<1x256xi32>
    %c0_i32_5 = arith.constant 0 : i32
    %10 = vector.broadcast %c0_i32_5 : i32 to vector<1x256xi32>
    %11 = arith.cmpi ne, %9, %10 : vector<1x256xi32>
    %c0_i32_6 = arith.constant 0 : i32
    %12 = vector.broadcast %c0_i32_6 : i32 to vector<1x256xi32>
    %13 = arith.cmpi slt, %9, %12 : vector<1x256xi32>
    %c0_i32_7 = arith.constant 0 : i32
    %14 = arith.cmpi slt, %7, %c0_i32_7 : i32
    %15 = vector.broadcast %14 : i1 to vector<1x256xi1>
    %16 = vector.broadcast %15 : vector<1x256xi1> to vector<1x256xi1>
    %17 = arith.xori %13, %16 : vector<1x256xi1>
    %18 = arith.andi %17, %11 : vector<1x256xi1>
    %19 = vector.broadcast %7 : i32 to vector<1x256xi32>
    %20 = arith.addi %9, %19 : vector<1x256xi32>
    %21 = arith.select %18, %20, %9 : vector<1x256xi1>, vector<1x256xi32>
    %c14_i32 = arith.constant 14 : i32
    %22 = vector.broadcast %c14_i32 : i32 to vector<1x256xi32>
    %23 = arith.cmpi slt, %21, %22 : vector<1x256xi32>
    %24 = arith.extui %23 : vector<1x256xi1> to vector<1x256xi32>
    %25 = arith.sitofp %24 : vector<1x256xi32> to vector<1x256xf32>
    %c224_i32 = arith.constant 224 : i32
    %26 = vector.broadcast %c224_i32 : i32 to vector<1x256xi32>
    %27 = arith.cmpi slt, %5, %26 : vector<1x256xi32>
    %28 = arith.extui %27 : vector<1x256xi1> to vector<1x256xi32>
    %29 = arith.sitofp %28 : vector<1x256xi32> to vector<1x256xf32>
    %30 = vector.extract_strided_slice %4 {offsets = [0, 1], sizes = [4, 255], strides = [1, 1]} : vector<4x256xf32> to vector<4x255xf32>
    %31 = vector.extract_strided_slice %4 {offsets = [0, 0], sizes = [4, 1], strides = [1, 1]} : vector<4x256xf32> to vector<4x1xf32>
    %32 = tpu.concatenate %30, %31 in 1 : vector<4x255xf32>, vector<4x1xf32> -> vector<4x256xf32>
    %cst = arith.constant 2.000000e+00 : f32
    %33 = vector.broadcast %cst : f32 to vector<4x256xf32>
    %34 = arith.mulf %33, %32 : vector<4x256xf32>
    %35 = arith.subf %34, %4 : vector<4x256xf32>
    %36 = vector.extract_strided_slice %4 {offsets = [0, 2], sizes = [4, 254], strides = [1, 1]} : vector<4x256xf32> to vector<4x254xf32>
    %37 = vector.extract_strided_slice %4 {offsets = [0, 0], sizes = [4, 2], strides = [1, 1]} : vector<4x256xf32> to vector<4x2xf32>
    %38 = tpu.concatenate %36, %37 in 1 : vector<4x254xf32>, vector<4x2xf32> -> vector<4x256xf32>
    %39 = arith.subf %35, %38 : vector<4x256xf32>
    %40 = vector.extract_strided_slice %4 {offsets = [0, 16], sizes = [4, 240], strides = [1, 1]} : vector<4x256xf32> to vector<4x240xf32>
    %41 = vector.extract_strided_slice %4 {offsets = [0, 0], sizes = [4, 16], strides = [1, 1]} : vector<4x256xf32> to vector<4x16xf32>
    %42 = tpu.concatenate %40, %41 in 1 : vector<4x240xf32>, vector<4x16xf32> -> vector<4x256xf32>
    %cst_8 = arith.constant 2.000000e+00 : f32
    %43 = vector.broadcast %cst_8 : f32 to vector<4x256xf32>
    %44 = arith.mulf %43, %42 : vector<4x256xf32>
    %45 = arith.subf %44, %4 : vector<4x256xf32>
    %46 = vector.extract_strided_slice %4 {offsets = [0, 32], sizes = [4, 224], strides = [1, 1]} : vector<4x256xf32> to vector<4x224xf32>
    %47 = vector.extract_strided_slice %4 {offsets = [0, 0], sizes = [4, 32], strides = [1, 1]} : vector<4x256xf32> to vector<4x32xf32>
    %48 = tpu.concatenate %46, %47 in 1 : vector<4x224xf32>, vector<4x32xf32> -> vector<4x256xf32>
    %49 = arith.subf %45, %48 : vector<4x256xf32>
    %50 = arith.mulf %39, %39 : vector<4x256xf32>
    %cst_9 = arith.constant 9.99999997E-7 : f32
    %51 = vector.broadcast %cst_9 : f32 to vector<4x256xf32>
    %52 = arith.addf %50, %51 : vector<4x256xf32>
    %53 = math.sqrt %52 : vector<4x256xf32>
    %54 = vector.broadcast %25 : vector<1x256xf32> to vector<4x256xf32>
    %55 = arith.mulf %53, %54 : vector<4x256xf32>
    %56 = vector.shape_cast %55 : vector<4x256xf32> to vector<1x4x256xf32>
    %cst_10 = arith.constant dense<0.000000e+00> : vector<1xf32>
    %57 = vector.multi_reduction <add>, %56, %cst_10 [1, 2] : vector<1x4x256xf32> to vector<1xf32>
    %58 = vector.shape_cast %57 : vector<1xf32> to vector<1x1x1xf32>
    %59 = vector.extract %58[0, 0, 0] : f32 from vector<1x1x1xf32>
    %60 = arith.mulf %49, %49 : vector<4x256xf32>
    %cst_11 = arith.constant 9.99999997E-7 : f32
    %61 = vector.broadcast %cst_11 : f32 to vector<4x256xf32>
    %62 = arith.addf %60, %61 : vector<4x256xf32>
    %63 = math.sqrt %62 : vector<4x256xf32>
    %64 = vector.broadcast %29 : vector<1x256xf32> to vector<4x256xf32>
    %65 = arith.mulf %63, %64 : vector<4x256xf32>
    %66 = vector.shape_cast %65 : vector<4x256xf32> to vector<1x4x256xf32>
    %cst_12 = arith.constant dense<0.000000e+00> : vector<1xf32>
    %67 = vector.multi_reduction <add>, %66, %cst_12 [1, 2] : vector<1x4x256xf32> to vector<1xf32>
    %68 = vector.shape_cast %67 : vector<1xf32> to vector<1x1x1xf32>
    %69 = vector.extract %68[0, 0, 0] : f32 from vector<1x1x1xf32>
    %70 = arith.addf %59, %69 : f32
    %71 = vector.broadcast %70 : f32 to vector<1x1x1xf32>
    %c0_13 = arith.constant 0 : index
    %c0_14 = arith.constant 0 : index
    %c0_15 = arith.constant 0 : index
    %72 = vector.load %arg3[%c0_13, %c0_14, %c0_15] : memref<1x1x1xf32, #tpu.memory_space<vmem>>, vector<1x1x1xf32>
    tpu.vector_store %arg3[%c0_13, %c0_14, %c0_15], %71 {strides = array<i32>} : memref<1x1x1xf32, #tpu.memory_space<vmem>>, vector<1x1x1xf32>,
    return
  }
  func.func @transform_0(%arg0: i32) -> (i32, i32, i32) {
    %c0_i32 = arith.constant 0 : i32
    %c0_i32_0 = arith.constant 0 : i32
    %c0_i32_1 = arith.constant 0 : i32
    return %arg0, %c0_i32, %c0_i32_0 : i32, i32, i32
  }
  func.func @transform_1(%arg0: i32) -> (i32, i32, i32) {
    %c0_i32 = arith.constant 0 : i32
    %c0_i32_0 = arith.constant 0 : i32
    %c0_i32_1 = arith.constant 0 : i32
    return %arg0, %c0_i32, %c0_i32_0 : i32, i32, i32
  }
  func.func @transform_2(%arg0: i32) -> (i32, i32, i32) {
    %c0_i32 = arith.constant 0 : i32
    %c0_i32_0 = arith.constant 0 : i32
    %c0_i32_1 = arith.constant 0 : i32
    return %arg0, %c0_i32, %c0_i32_0 : i32, i32, i32
  }
}

</mosaic_0001>

<bundles_post_ra>
// kernel: tpu_custom_call.1
= control target key start
LH: loop header
LB: loop body
LE: loop exit
PB: predicated region body
PF: predicated region fallthrough
CT: control target
= control target key end

     0   :  { %7 = vsyncpa [#allocation3], 0  ;;  %s806_s0 = inlined_call_operand.hbm [shape: f32[2,4,256], index: 0, kind: input, shape index: {}]   ;;  %s807_s1 = inlined_call_operand.hbm [shape: f32[2,4,256], index: 1, kind: input, shape index: {}]   ;;  %s808_s2 = inlined_call_operand.vmem [shape: f32[2,1,1], index: 2, kind: output, shape index: {}]  }
   0x1   :  { %9 = vsyncpa [#allocation3 + $0x1], 0 }
   0x2   :  { %10 = vsyncpa [#allocation5], 0 }
   0x3   :  { %12 = vsyncpa [#allocation5 + $0x1], 0  ;;  %s646_s9 = smov 0   ;;  %s648_s10 = smov 0  }
   0x4   :  { %s650_s11 = smov 0   ;;  %s652_s12 = smov 0  }
   0x5 LB: > { %s665_s13 = sadd.s32 4294967295, %s622_s12   ;;  %s668_s14 = sadd.s32 1, %s622_s12   ;;  %s622_s12 = sphi %s652_s12, %s820_s12   ;;  %s618_s11 = sphi %s650_s11, %s819_s11   ;;  %s614_s10 = sphi %s648_s10, %s818_s10   ;;  %s610_s9 = sphi %s646_s9, %s817_s9  }
   0x6   : > { %s22_s15 = ssub.s32 %s622_s12, %s668_s14  ;;  %s25_s16 = sadd.s32 1, %s618_s11 }
   0x7   : > { %p23_p0 = scmp.eq.s32.totalorder %s22_s15, 0  ;;  %p32_p1 = scmp.ne.s32.totalorder %s618_s11, %s614_s10 }
   0x8   : > { %p33_p2 = scmp.eq.s32.totalorder %s622_s12, 0  ;;  %p38_p3 = scmp.ne.s32.totalorder %s614_s10, %s610_s9 }
   0x9   : > { %s678_s17 = scalar_select %p23_p0, %s618_s11, %s25_s16  }
   0xa   : > { %p34_p4 = por %p33_p2, %p32_p1  ;;  %p39_p5 = scmp.eq.s32.totalorder %s665_s13, 0 }
   0xb   : > { %p478_p6 = scmp.lt.s32.totalorder %s622_s12, 2  ;;  %s687_s19 = sand.u32 1, %s618_s11  }
   0xc   : > { %p682_p7 = por %p39_p5, %p38_p3  ;;  %s447_s20 = sshll.u32 %s687_s19, 3 }
   0xd   : > { %s461_s21 = sshll.u32 %s622_s12, 7  ;;  %s118_s25 = scalar_lea.vmem [#allocation2], %s447_s20 }
   0xe   : > { %s810_s18 = scalar_select %p682_p7, 1, 0 }
   0xf   : > { %s696_s24 = scalar_lea.hbm %s806_s0, %s461_s21  ;;  %s126_s26 = sshll.u32 %s118_s25, 4  ;;  %s700_s26 = int_to_ptr.vmem [resolvable:$true] %s126_s26 }
  0x10   : > { %p702_p8 = pnand %p478_p6, %p34_p4  ;;  %s115_s28 = scalar_lea.sflag [#allocation3], %s687_s19 }
  0x11   : > { %s524_s29 = scalar_lea.hbm %s696_s24, 128  ;;  %s529_s4 = scalar_lea.hbm %s806_s0, 256 }
  0x12   : > { %p525_p11 = scmp.ne.s32.totalorder %s696_s24, %s524_s29  ;;  %p526_p12 = pneg %p702_p8 }
  0x13   : > { %p530_p1 = scmp.lt.u32.totalorder %s696_s24, %s806_s0  ;;  %p531_p2 = scmp.lt.u32.totalorder %s529_s4, %s524_s29 }
  0x14   : > { %p527_p13 = pnand %p526_p12, %p525_p11  ;;  %p533_p4 = scmp.lt.u32.totalorder %s524_s29, %s696_s24 }
  0x15   : > { %p532_p3 = por %p531_p2, %p530_p1 }
  0x16   : > { %p528_p0 = pneg %p527_p13 }
  0x17   : > { %p534_p5 = por %p533_p4, %p532_p3 }
  0x19   : > { %p535_p6 = pnand %p534_p5, %p528_p0 }
  0x1b   : > { %538 = shalt.err (!%p535_p6)
}
  0x1c   : > { %s539_s7 = scalar_lea.vmem %s700_s26, 128  ;;  %s624_s8 = smov [#allocation2]  }
  0x1d   : > { %p540_p11 = scmp.ne.s32.totalorder %s700_s26, %s539_s7  ;;  %s544_s9 = sshll.u32 %s624_s8, 4  ;;  %s545_s9 = int_to_ptr.vmem [resolvable:$false] %s544_s9 }
  0x1e   : > { %s546_s15 = scalar_lea.vmem %s545_s9, 256  ;;  %p547_p10 = scmp.lt.s32.totalorder %s700_s26, %s545_s9 }
  0x1f   : > { %p542_p13 = pnand %p540_p11, %p526_p12  ;;  %p548_p1 = scmp.lt.s32.totalorder %s546_s15, %s539_s7 }
  0x21   : > { %p543_p9 = pneg %p542_p13  ;;  %p549_p2 = por %p548_p1, %p547_p10 }
  0x23   : > { %p550_p3 = pnand %p549_p2, %p543_p9 }
  0x25   : > { %553 = shalt.err (!%p550_p3)
}
  0x26   : > { %474 = dma.hbm_to_vmem [thread:$0]  (!%p702_p8), %s696_s24, 128, %s700_s26, %s115_s28  }
  0x27   : > { %p812_p0 = scmp.lt.s32.totalorder %s622_s12, 3  ;;  %p813_p4 = scmp.ge.s32.totalorder %s622_s12, 1 }
  0x28   : > { %s747_s25 = scalar_lea.hbm %s807_s1, %s461_s21  ;;  %s137_s29 = scalar_lea.vmem [#allocation4], %s447_s20 }
  0x29   : > { %p738_p5 = pnand %p813_p4, %p812_p0  ;;  %s145_s30 = sshll.u32 %s137_s29, 4  ;;  %s146_s30 = int_to_ptr.vmem [resolvable:$true] %s145_s30 }
  0x2a   : > { %s134_s24 = scalar_lea.sflag [#allocation5], %s687_s19  ;;  %s554_s26 = scalar_lea.hbm %s747_s25, 128 }
  0x2b   : > { %s814_s16 = scalar_select %p738_p5, 1, 0 }
  0x2c   : > { %p555_p9 = scmp.ne.s32.totalorder %s747_s25, %s554_s26  ;;  %s559_s21 = scalar_lea.hbm %s807_s1, 256 }
  0x2d   : > { %p560_p11 = scmp.lt.u32.totalorder %s747_s25, %s807_s1  ;;  %p561_p13 = scmp.lt.u32.totalorder %s559_s21, %s554_s26 }
  0x2e   : > { %p557_p10 = pnand %p555_p9, %p526_p12  ;;  %p563_p2 = scmp.lt.u32.totalorder %s554_s26, %s747_s25 }
  0x2f   : > { %p562_p1 = por %p561_p13, %p560_p11 }
  0x30   : > { %p558_p6 = pneg %p557_p10 }
  0x31   : > { %p564_p3 = por %p563_p2, %p562_p1 }
  0x33   : > { %p565_p0 = pnand %p564_p3, %p558_p6 }
  0x35   : > { %568 = shalt.err (!%p565_p0)
}
  0x36   : > { %s569_s19 = scalar_lea.vmem %s146_s30, 128  ;;  %s625_s20 = smov [#allocation4]  }
  0x37   : > { %p570_p4 = scmp.ne.s32.totalorder %s146_s30, %s569_s19  ;;  %s574_s5 = sshll.u32 %s625_s20, 4  ;;  %s575_s5 = int_to_ptr.vmem [resolvable:$false] %s574_s5 }
  0x38   : > { %s576_s6 = scalar_lea.vmem %s575_s5, 256  ;;  %p577_p7 = scmp.lt.s32.totalorder %s146_s30, %s575_s5 }
  0x39   : > { %p572_p9 = pnand %p570_p4, %p526_p12  ;;  %p578_p5 = scmp.lt.s32.totalorder %s576_s6, %s569_s19 }
  0x3b   : > { %p573_p10 = pneg %p572_p9  ;;  %p579_p11 = por %p578_p5, %p577_p7 }
  0x3d   : > { %p580_p13 = pnand %p579_p11, %p573_p10 }
  0x3f   : > { %583 = shalt.err (!%p580_p13)
}
  0x40   : > { %477 = dma.hbm_to_vmem [thread:$0]  (!%p702_p8), %s747_s25, 128, %s146_s30, %s134_s24  }
  0x41   : > { %p815_p6 = scmp.ne.s32.totalorder %s814_s16, 0 }
  0x42   : > { %s156_s7 = sand.u32 (!%p815_p6), 1, %s614_s10   ;;  %p816_p12 = scmp.ne.s32.totalorder (!%p815_p6), %s810_s18, 0 }
  0x43   : > { %154 = sbr.rel (%p815_p6) target bundleno = 445 (0x1bd), region = 28  ;;  %s454_s8 = sshll.u32 (!%p815_p6), %s156_s7, 3 }
  0x44   : > { %s157_s9 = scalar_lea.sflag (!%p815_p6), [#allocation3], %s156_s7  ;;  %s160_s15 = scalar_lea.vmem (!%p815_p6), [#allocation2], %s454_s8 }
  0x4a   : > { %601 = dma.done.wait (%p816_p12), %s157_s9, 128  }
  0x4b   : > { %603 = vsyncadd (%p816_p12), %s157_s9, 4294967168  ;;  %s166_s22 = scalar_lea.sflag [#allocation5], %s156_s7  ;;  %s169_s23 = scalar_lea.vmem [#allocation4], %s454_s8 }
  0x4c   : > { %605 = dma.done.wait (%p816_p12), %s166_s22, 128  }
  0x4d   : > { %607 = vsyncadd (%p816_p12), %s166_s22, 4294967168  ;;  %v196_v0 = vld [vmem:[%s160_s15] sm:$0xff]  ;;  %v197_v1 = vld [vmem:[%s169_s23] sm:$0xff]  ;;  %s626_s27 = smov 112   ;;  %s627_s16 = smov 127   ;;  %vm271_vm0 = vcmask 916480   ;;  %v199_v18 = vlaneseq }
  0x4e   : > { %v198_v2 = vsub.f32 %v196_v0, %v197_v1  ;;  %s628_s25 = smov 126   ;;  %s629_s29 = smov 96   ;;  %vm244_vm1 = vcmask 1039360   ;;  %vm259_vm2 = vcmask 1031168   ;;  %vm285_vm3 = vcmask 785408  }
  0x4f   : > { %v200_v33 = vand.u32 127, %v199_v18  ;;  %v630_v45 = vmov 0.0   ;;  %vm313_vm8 = vcmask 1043456   ;;  %p193_p7 = scmp.lt.s32.totalorder %s665_s13, 1 }
  0x50   : > { %267 = vrot.lane.b32.xlu1 %v198_v2, %s626_s27  ;;  %240 = vrot.lane.b32.xlu0 %v198_v2, %s627_s16  ;;  %v239_v3 = vcombine.high %v198_v2, %v198_v2 }
  0x51   : > { %v201_v42 = vadd.s32 128, %v200_v33  ;;  %v206_v43 = vand.u32 15, %v200_v33  ;;  %s822_s13 = smov (!%p193_p7, %s665_s13), 1 }
  0x52   : > { %s195_s12 = scalar_lea.vmem %s808_s2, %s822_s13 }
  0x53   : > { %v213_v44 = vand.u32 15, %v201_v42  ;;  %vm226_vm4 = vcmp.lt.s32.totalorder %v206_v43, 14  ;;  %vm233_vm6 = vcmp.lt.s32.totalorder %v201_v42, 224 }
  0x54   : > { %255 = vrot.lane.b32.xlu0 %v198_v2, %s628_s25  ;;  %269 = vrot.lane.b32.xlu1 %v239_v3, %s626_s27  ;;  %v456_v46 = vsel %vm226_vm4, 1.0, %v630_v45  ;;  %v458_v49 = vsel %vm233_vm6, 1.0, %v630_v45 }
  0x55   : > { %vm227_vm5 = vcmp.lt.s32.totalorder %v213_v44, 14 }
  0x56   : > { %v457_v48 = vsel %vm227_vm5, 1.0, %v630_v45 }
  0x58   : > { %257 = vrot.lane.b32.xlu1 %v239_v3, %s628_s25  ;;  %242 = vrot.lane.b32.xlu0 %v239_v3, %s627_s16 }
  0x5c   : > { %283 = vrot.lane.b32.xlu1 %v239_v3, %s629_s29  ;;  %281 = vrot.lane.b32.xlu0 %v198_v2, %s629_s29 }
  0xc2   : > { %v268_v4 = vpop.permute.xlu1 %267  ;;  %v241_v5 = vpop.permute.xlu0 %240 }
  0xc6   : > { %v256_v6 = vpop.permute.xlu0 %255  ;;  %v270_v7 = vpop.permute.xlu1 %269 }
  0xc7   : > { %v272_v8 = vsel %vm271_vm0, %v268_v4, %v270_v7  ;;  %v276_v9 = vsel %vm271_vm0, %v270_v7, %v268_v4  ;;  %vm360_vm0 = vcmask 0  }
  0xc8   : > { %v277_v10 = vmul.f32 2.0, %v272_v8  ;;  %v278_v11 = vmul.f32 2.0, %v276_v9 }
  0xca   : > { %v258_v12 = vpop.permute.xlu1 %257  ;;  %v243_v13 = vpop.permute.xlu0 %242  ;;  %v279_v19 = vsub.f32 %v277_v10, %v198_v2  ;;  %v280_v20 = vsub.f32 %v278_v11, %v239_v3 }
  0xcb   : > { %v245_v14 = vsel %vm244_vm1, %v241_v5, %v243_v13  ;;  %v249_v15 = vsel %vm244_vm1, %v243_v13, %v241_v5  ;;  %v260_v25 = vsel %vm259_vm2, %v256_v6, %v258_v12  ;;  %v264_v26 = vsel %vm259_vm2, %v258_v12, %v256_v6 }
  0xcc   : > { %v250_v16 = vmul.f32 2.0, %v245_v14  ;;  %v251_v17 = vmul.f32 2.0, %v249_v15 }
  0xce   : > { %v253_v21 = vsub.f32 %v250_v16, %v198_v2  ;;  %v254_v22 = vsub.f32 %v251_v17, %v239_v3  ;;  %v284_v23 = vpop.permute.xlu1 %283  ;;  %v282_v24 = vpop.permute.xlu0 %281 }
  0xcf   : > { %v286_v27 = vsel %vm285_vm3, %v282_v24, %v284_v23  ;;  %v290_v28 = vsel %vm285_vm3, %v284_v23, %v282_v24 }
  0xd0   : > { %v265_v29 = vsub.f32 %v253_v21, %v260_v25  ;;  %v266_v30 = vsub.f32 %v254_v22, %v264_v26  ;;  %v291_v31 = vsub.f32 %v279_v19, %v286_v27  ;;  %v292_v32 = vsub.f32 %v280_v20, %v290_v28 }
  0xd2   : > { %v293_v34 = vmul.f32 %v265_v29, %v265_v29  ;;  %v294_v35 = vmul.f32 %v266_v30, %v266_v30  ;;  %v326_v36 = vmul.f32 %v291_v31, %v291_v31  ;;  %v327_v37 = vmul.f32 %v292_v32, %v292_v32 }
  0xd4   : > { %v295_v38 = vadd.f32 1e-06, %v293_v34  ;;  %v296_v39 = vadd.f32 1e-06, %v294_v35  ;;  %v328_v40 = vadd.f32 1e-06, %v326_v36 }
  0xd5   : > { %v329_v41 = vadd.f32 1e-06, %v327_v37 }
  0xd6   : > { %516 = vrsqrt.f32 %v295_v38  ;;  %vm299_vm7 = vcmp.eq.f32.partialorder %v295_v38, inf  ;;  %vm301_vm9 = vcmp.eq.f32.partialorder %v295_v38, 0.0  ;;  %v302_v52 = vand.u32 2147483648, %v295_v38 }
  0xd7   : > { %518 = vrsqrt.f32 %v329_v41  ;;  %vm306_vm10 = vcmp.eq.f32.partialorder %v296_v39, inf  ;;  %vm308_vm11 = vcmp.eq.f32.partialorder %v296_v39, 0.0  ;;  %v309_v54 = vand.u32 2147483648, %v296_v39 }
  0xd8   : > { %520 = vrsqrt.f32 %v296_v39  ;;  %vm332_vm12 = vcmp.eq.f32.partialorder %v328_v40, inf  ;;  %vm339_vm13 = vcmp.eq.f32.partialorder %v329_v41, inf  ;;  %v342_v59 = vand.u32 2147483648, %v329_v41 }
  0xd9   : > { %522 = vrsqrt.f32 %v328_v40  ;;  %vm341_vm14 = vcmp.eq.f32.partialorder %v329_v41, 0.0  ;;  %v335_v1 = vand.u32 2147483648, %v328_v40  ;;  %vm334_vm15 = vcmp.eq.f32.partialorder %v328_v40, 0.0 }
  0xe0   : > { %v517_v47 = vpop.eup %516 }
  0xe1   : > { %v519_v50 = vpop.eup %518  ;;  %v298_v51 = vmul.f32 %v517_v47, %v295_v38 }
  0xe2   : > { %v521_v53 = vpop.eup %520  ;;  %v338_v55 = vmul.f32 %v519_v50, %v329_v41 }
  0xe3   : > { %v523_v56 = vpop.eup %522  ;;  %v300_v57 = vsel %vm299_vm7, %v295_v38, %v298_v51  ;;  %v305_v58 = vmul.f32 %v521_v53, %v296_v39 }
  0xe4   : > { %v303_v60 = vsel %vm301_vm9, %v302_v52, %v300_v57  ;;  %v331_v61 = vmul.f32 %v523_v56, %v328_v40  ;;  %v340_v62 = vsel %vm339_vm13, %v329_v41, %v338_v55 }
  0xe5   : > { %v307_v63 = vsel %vm306_vm10, %v296_v39, %v305_v58  ;;  %v311_v0 = vmul.f32 %v456_v46, %v303_v60  ;;  %v343_v2 = vsel %vm341_vm14, %v342_v59, %v340_v62 }
  0xe6   : > { %v310_v3 = vsel %vm308_vm11, %v309_v54, %v307_v63  ;;  %v333_v4 = vsel %vm332_vm12, %v328_v40, %v331_v61  ;;  %v345_v5 = vmul.f32 %v458_v49, %v343_v2 }
  0xe7   : > { %v312_v6 = vmul.f32 %v457_v48, %v310_v3  ;;  %v314_v7 = vsel %vm313_vm8, %v311_v0, 0.0  ;;  %v336_v8 = vsel %vm334_vm15, %v335_v1, %v333_v4 }
  0xe8   : > { %v346_v9 = vsel %vm313_vm8, %v336_v8, 0.0  ;;  %v347_v10 = vsel %vm313_vm8, %v345_v5, 0.0 }
  0xe9   : > { %v315_v11 = vsel %vm313_vm8, %v312_v6, 0.0  ;;  %v348_v12 = vadd.f32 %v347_v10, %v346_v9 }
  0xea   : > { %v316_v13 = vadd.f32 %v315_v11, %v314_v7 }
  0xeb   : > { %349 = vadd.xlane.f32.xlu1 %v348_v12 }
  0xec   : > { %317 = vadd.xlane.f32.xlu0 %v316_v13 }
 0x178   : > { %v350_v14 = vpop.xlane.xlu1 %349 }
 0x179   : > { %v351_v15 = vrot.slane %v350_v14, 4  ;;  %v318_v16 = vpop.xlane.xlu0 %317 }
 0x17a   : > { %v319_v17 = vrot.slane %v318_v16, 4 }
 0x17b   : > { %v352_v18 = vadd.f32 %v351_v15, %v350_v14 }
 0x17c   : > { %v320_v19 = vadd.f32 %v319_v17, %v318_v16 }
 0x17d   : > { %v353_v20 = vrot.slane %v352_v18, 2 }
 0x17e   : > { %v321_v21 = vrot.slane %v320_v19, 2 }
 0x17f   : > { %v354_v22 = vadd.f32 %v353_v20, %v352_v18 }
 0x180   : > { %v322_v23 = vadd.f32 %v321_v21, %v320_v19 }
 0x181   : > { %v355_v24 = vrot.slane %v354_v22, 1 }
 0x182   : > { %v323_v25 = vrot.slane %v322_v23, 1 }
 0x183   : > { %v356_v26 = vadd.f32 %v355_v24, %v354_v22 }
 0x184   : > { %v324_v27 = vadd.f32 %v323_v25, %v322_v23 }
 0x186   : > { %463 = vpush %v324_v27 }
 0x187   : > { %465 = vpush %v356_v26 }
 0x1b7   : > { %s464_s18 = spop %463 }
 0x1b8   : > { %s466_s30 = spop %465 }
 0x1b9   : > { %s358_s28 = sadd.f32 %s466_s30, %s464_s18 }
 0x1bb   : > { %v359_v28 = vstv %s358_s28 }
 0x1bc   : > { %361 = vst.msk [vmem:[%s195_s12] sm:$0x1] %vm360_vm0, %v359_v28 }
 0x1bd PF: > { %p15_p8 = scmp.ge.s32.totalorder %s668_s14, 4   ;;  %s817_s9 = smov %s614_s10 }
 0x1be   : > { %s818_s10 = smov %s618_s11  ;;  %s819_s11 = smov %s678_s17 }
 0x1bf   : > { %s820_s12 = smov %s668_s14  ;;  %17 = sbr.rel (!%p15_p8) target bundleno = 5 (0x5), region = 81 }
 0x1c6   :  { %379 = vsyncpa [#allocation3], 1 }
 0x1c7   :  { %381 = vsyncpa [#allocation3 + $0x1], 1 }
 0x1c8   :  { %382 = vsyncpa [#allocation5], 1 }
 0x1c9   :  { %384 = vsyncpa [#allocation5 + $0x1], 1 }

</bundles_post_ra>
